<compile_context>
chip_gen: v7x
topology: tpu7x:2x2x1
jax: 0.10.0
libtpu: 0.0.40
codegen_flags: <defaults>
</compile_context>

<pallas_src>
import jax
import jax.numpy as jnp
from jax.experimental import pallas as pl
from jax.experimental.pallas import tpu as pltpu

HID_PAD = 128        # hidden (output/N) dim padded to a full lane width
CLS_PAD = 128        # class dim padded to a full lane width (lane-dense output store)
ROWS_PER_TILE = 128  # packed node rows per grid step; 128 fills a v5e MXU tile
                     # (use 256 on v6e/v7x for a full 256x256 MXU pass)


def classifier_kernel(adj_ref, s_ref, w1_ref, b1_ref, w2_ref, b2_ref,
                      mean_ref, wc_ref, bc_ref, out_ref):
    """One block-diagonal super-tile of P graphs (P*n node rows) per grid step."""
    H = w2_ref.shape[0]   # true hidden size (un-padded contraction dim)

    # Layer 1 (VPU, f32): GraphConv(1 -> H); s = Ahat @ in_deg was precomputed
    # (associativity), so the layer reduces to an outer-product + bias + relu.
    h1 = jnp.maximum(s_ref[...] * w1_ref[...] + b1_ref[...], 0.0)          # (Pn, H)

    # Layer 2 (MXU, bf16 operands / f32 accumulation): relu(Ahat @ (h1 @ W2) + b2).
    xw2 = jnp.dot(h1.astype(jnp.bfloat16), w2_ref[...],
                  preferred_element_type=jnp.float32)                      # (Pn, Hp)
    h2 = jnp.dot(adj_ref[...], xw2.astype(jnp.bfloat16),
                 preferred_element_type=jnp.float32) + b2_ref[...]
    h2 = jnp.maximum(h2, 0.0)                                              # (Pn, Hp) f32

    # Readout (MXU, f32): block-diagonal mean-selector -> one row per graph
    # (dgl.mean_nodes for all P packed graphs in a single matmul).
    hg = jnp.dot(mean_ref[...], h2, preferred_element_type=jnp.float32)    # (P, Hp)

    # Classify (MXU): contract only the true hidden size; N stays lane-dense (Cp=128).
    logits = jnp.dot(hg[:, :H].astype(jnp.bfloat16), wc_ref[...],
                     preferred_element_type=jnp.float32) + bc_ref[...]     # (P, Cp)

    # Sublane- and lane-dense store: one row per graph, no broadcast.
    out_ref[...] = logits


def classifier_forward(a_hat, s, w1, b1, w2, b2, wc, bc, rows_per_tile=ROWS_PER_TILE):
    """a_hat: (G, n, n) normalized per-graph adjacency; s: (G, n, 1) = Ahat @ in_deg."""
    G, n, _ = a_hat.shape
    H = w1.shape[1]
    C = wc.shape[1]
    Hp, Cp = HID_PAD, CLS_PAD

    # ---- pack P graphs into block-diagonal super-tiles -----------------------------
    P = max(1, rows_per_tile // n)
    if P >= 8:
        P = (P // 8) * 8          # keep the (P, Cp) output block sublane-aligned
    # TODO(synk): for large n (P < 8) fall back to one graph per step with an 8-row
    #             output pad, or a K-tiled accumulator grid for very large n.
    g_pad = pl.cdiv(G, P) * P     # pad batch with zero "dummy" graphs
    T = g_pad // P
    Pn = P * n

    a_pad = jnp.pad(a_hat.astype(jnp.float32), ((0, g_pad - G), (0, 0), (0, 0)))
    s_pad = jnp.pad(s.astype(jnp.float32), ((0, g_pad - G), (0, 0), (0, 0)))
    eye_p = jnp.eye(P, dtype=jnp.float32)
    adj_packed = jnp.einsum('pq,tpij->tpiqj', eye_p,
                            a_pad.reshape(T, P, n, n)).reshape(T, Pn, Pn)
    adj_packed = adj_packed.astype(jnp.bfloat16)                 # MXU operand
    s_packed = s_pad.reshape(T, Pn, 1)
    mean_sel = jnp.repeat(eye_p, n, axis=1) / float(n)           # (P, Pn) mean_nodes

    # ---- weights: true-K contraction dims, lane-dense (128-wide) N dims -------------
    w1p = w1.astype(jnp.float32)                                                   # (1, H)
    b1p = b1.astype(jnp.float32)                                                   # (1, H)
    w2p = jnp.zeros((H, Hp), jnp.float32).at[:, :H].set(w2).astype(jnp.bfloat16)   # (H, Hp)
    b2p = jnp.zeros((1, Hp), jnp.float32).at[:, :H].set(b2)
    wcp = jnp.zeros((H, Cp), jnp.float32).at[:, :C].set(wc).astype(jnp.bfloat16)   # (H, Cp)
    bcp = jnp.zeros((1, Cp), jnp.float32).at[:, :C].set(bc)

    out = pl.pallas_call(
        classifier_kernel,
        out_shape=jax.ShapeDtypeStruct((g_pad, Cp), jnp.float32),
        grid_spec=pltpu.PrefetchScalarGridSpec(
            num_scalar_prefetch=0,
            grid=(T,),
            in_specs=[
                pl.BlockSpec((None, Pn, Pn), lambda t: (t, 0, 0)),  # packed Ahat (bf16)
                pl.BlockSpec((None, Pn, 1), lambda t: (t, 0, 0)),   # packed s (f32)
                pl.BlockSpec((1, H), lambda t: (0, 0)),             # W1
                pl.BlockSpec((1, H), lambda t: (0, 0)),             # b1
                pl.BlockSpec((H, Hp), lambda t: (0, 0)),            # W2 (bf16)
                pl.BlockSpec((1, Hp), lambda t: (0, 0)),            # b2
                pl.BlockSpec((P, Pn), lambda t: (0, 0)),            # mean selector
                pl.BlockSpec((H, Cp), lambda t: (0, 0)),            # Wc (bf16)
                pl.BlockSpec((1, Cp), lambda t: (0, 0)),            # bc
            ],
            out_specs=pl.BlockSpec((P, Cp), lambda t: (t, 0)),      # P graph rows / step
        ),
        compiler_params=pltpu.CompilerParams(
            dimension_semantics=("parallel",),   # packed-graph tiles are independent
        ),
    )(adj_packed, s_packed, w1p, b1p, w2p, b2p, mean_sel, wcp, bcp)

    # Drop dummy-graph rows and the class-dim padding.
    return out[:G, :C]


# ----------------------------- graph-preprocessing glue (plain JAX) -----------------------------

def build_example_graphs(n, n_graphs):
    """Dense per-graph adjacencies (A[v,u]=1 for edge u->v). Rings; odd graphs get a chord."""
    def ring(n):
        A = jnp.zeros((n, n), jnp.float32)
        idx = jnp.arange(n)
        A = A.at[(idx + 1) % n, idx].set(1.0)
        A = A.at[idx, (idx + 1) % n].set(1.0)
        return A
    adjs = []
    for g in range(n_graphs):
        A = ring(n)
        if g % 2 == 1:
            A = A.at[0, n // 2].set(1.0)
            A = A.at[n // 2, 0].set(1.0)
        adjs.append(A)
    return adjs


def preprocess_graphs(adj_list):
    """DGL 'both' normalization per graph + precomputed layer-1 aggregation s = Ahat @ deg."""
    A = jnp.stack(adj_list)                                  # (G, n, n)
    in_deg = A.sum(axis=2)                                   # (G, n)
    out_deg = A.sum(axis=1)                                  # (G, n)
    inv_in = 1.0 / jnp.sqrt(jnp.maximum(in_deg, 1.0))
    inv_out = 1.0 / jnp.sqrt(jnp.maximum(out_deg, 1.0))
    A_hat = inv_in[:, :, None] * A * inv_out[:, None, :]     # (G, n, n)
    s = jnp.einsum('gvu,gu->gv', A_hat, in_deg)[..., None]   # (G, n, 1)  == Ahat @ in_deg
    return A_hat, in_deg, s


def reference_forward(a_hat, in_deg, w1, b1, w2, b2, wc, bc):
    """Pure-JAX f32 reference of the original module semantics (per graph)."""
    outs = []
    for g in range(a_hat.shape[0]):
        A = a_hat[g]
        h0 = in_deg[g][:, None]
        h1 = jnp.maximum(A @ (h0 @ w1) + b1, 0.0)
        h2 = jnp.maximum(A @ (h1 @ w2) + b2, 0.0)
        hg = h2.mean(axis=0, keepdims=True)
        outs.append(hg @ wc + bc)
    return jnp.concatenate(outs, axis=0)


if __name__ == "__main__":
    # Small shapes consistent with the module: in_dim=1 (degree feature), hidden=32,
    # n_classes=3; a batch of 20 graphs with 8 nodes each (padded to 2 packed tiles
    # of 16 graphs -> grid of length 2).
    in_dim, hidden_dim, n_classes = 1, 32, 3
    nodes_per_graph, n_graphs = 8, 20

    adjs = build_example_graphs(nodes_per_graph, n_graphs)
    a_hat, in_deg, s = preprocess_graphs(adjs)

    key = jax.random.PRNGKey(0)
    k1, k2, k3, k4, k5, k6 = jax.random.split(key, 6)
    w1 = jax.random.normal(k1, (in_dim, hidden_dim), jnp.float32) * 0.5
    b1 = jax.random.normal(k2, (1, hidden_dim), jnp.float32) * 0.1
    w2 = jax.random.normal(k3, (hidden_dim, hidden_dim), jnp.float32) * (1.0 / jnp.sqrt(hidden_dim))
    b2 = jax.random.normal(k4, (1, hidden_dim), jnp.float32) * 0.1
    wc = jax.random.normal(k5, (hidden_dim, n_classes), jnp.float32) * (1.0 / jnp.sqrt(hidden_dim))
    bc = jax.random.normal(k6, (1, n_classes), jnp.float32) * 0.1

    logits = classifier_forward(a_hat, s, w1, b1, w2, b2, wc, bc)
    jax.block_until_ready(logits)

    ref = reference_forward(a_hat, in_deg, w1, b1, w2, b2, wc, bc)
    assert logits.shape == (n_graphs, n_classes)
    # bf16 MXU operands (f32 accumulation) vs. an all-f32 reference -> loose tolerance.
    assert jnp.allclose(logits, ref, atol=5e-2, rtol=5e-2), (logits, ref)

    print("KERNEL_OK")
</pallas_src>

<mosaic_0001>
module attributes {stable_mosaic.version = 11 : i64} {
  func.func @classifier_kernel(%arg0: i32, %arg1: memref<1x128x128xbf16, #tpu.memory_space<vmem>>, %arg2: memref<1x128x1xf32, #tpu.memory_space<vmem>>, %arg3: memref<1x32xf32, #tpu.memory_space<vmem>>, %arg4: memref<1x32xf32, #tpu.memory_space<vmem>>, %arg5: memref<32x128xbf16, #tpu.memory_space<vmem>>, %arg6: memref<1x128xf32, #tpu.memory_space<vmem>>, %arg7: memref<16x128xf32, #tpu.memory_space<vmem>>, %arg8: memref<32x128xbf16, #tpu.memory_space<vmem>>, %arg9: memref<1x128xf32, #tpu.memory_space<vmem>>, %arg10: memref<16x128xf32, #tpu.memory_space<vmem>>) attributes {dimension_semantics = [#tpu.dimension_semantics<parallel>], iteration_bounds = array<i64: 2>, scalar_prefetch = 0 : i64, scratch_operands = 0 : i64, tpu.core_type = #tpu.core_type<tc>, window_params = [{transform_indices = @transform_0, window_bounds = array<i64: 1, 128, 128>}, {transform_indices = @transform_1, window_bounds = array<i64: 1, 128, 1>}, {pipeline_mode = #tpu.pipeline_mode<synchronous>, transform_indices = @transform_2, window_bounds = array<i64: 1, 32>}, {pipeline_mode = #tpu.pipeline_mode<synchronous>, transform_indices = @transform_3, window_bounds = array<i64: 1, 32>}, {pipeline_mode = #tpu.pipeline_mode<synchronous>, transform_indices = @transform_4, window_bounds = array<i64: 32, 128>}, {pipeline_mode = #tpu.pipeline_mode<synchronous>, transform_indices = @transform_5, window_bounds = array<i64: 1, 128>}, {pipeline_mode = #tpu.pipeline_mode<synchronous>, transform_indices = @transform_6, window_bounds = array<i64: 16, 128>}, {pipeline_mode = #tpu.pipeline_mode<synchronous>, transform_indices = @transform_7, window_bounds = array<i64: 32, 128>}, {pipeline_mode = #tpu.pipeline_mode<synchronous>, transform_indices = @transform_8, window_bounds = array<i64: 1, 128>}, {transform_indices = @transform_9, window_bounds = array<i64: 16, 128>}]} {
    %c0 = arith.constant 0 : index
    %c0_0 = arith.constant 0 : index
    %c0_1 = arith.constant 0 : index
    %0 = vector.load %arg2[%c0, %c0_0, %c0_1] : memref<1x128x1xf32, #tpu.memory_space<vmem>>, vector<1x128x1xf32>
    %1 = vector.shape_cast %0 : vector<1x128x1xf32> to vector<128x1xf32>
    %c0_2 = arith.constant 0 : index
    %c0_3 = arith.constant 0 : index
    %2 = vector.load %arg3[%c0_2, %c0_3] : memref<1x32xf32, #tpu.memory_space<vmem>>, vector<1x32xf32>
    %3 = vector.broadcast %1 : vector<128x1xf32> to vector<128x32xf32>
    %4 = vector.broadcast %2 : vector<1x32xf32> to vector<128x32xf32>
    %5 = arith.mulf %3, %4 : vector<128x32xf32>
    %c0_4 = arith.constant 0 : index
    %c0_5 = arith.constant 0 : index
    %6 = vector.load %arg4[%c0_4, %c0_5] : memref<1x32xf32, #tpu.memory_space<vmem>>, vector<1x32xf32>
    %7 = vector.broadcast %6 : vector<1x32xf32> to vector<128x32xf32>
    %8 = arith.addf %5, %7 : vector<128x32xf32>
    %cst = arith.constant 0.000000e+00 : f32
    %9 = vector.broadcast %cst : f32 to vector<128x32xf32>
    %10 = arith.maximumf %8, %9 : vector<128x32xf32>
    %11 = arith.truncf %10 : vector<128x32xf32> to vector<128x32xbf16>
    %c0_6 = arith.constant 0 : index
    %c0_7 = arith.constant 0 : index
    %12 = vector.load %arg5[%c0_6, %c0_7] : memref<32x128xbf16, #tpu.memory_space<vmem>>, vector<32x128xbf16>
    %cst_8 = arith.constant dense<0.000000e+00> : vector<128x128xf32>
    %13 = tpu.matmul %11, %12, %cst_8 {dimension_numbers = #tpu.dot_dimension_numbers<[1], [0], [0], [1], [0, 0, 1, 1], [], []>} : vector<128x32xbf16>, vector<32x128xbf16>, vector<128x128xf32> -> vector<128x128xf32>
    %c0_9 = arith.constant 0 : index
    %c0_10 = arith.constant 0 : index
    %c0_11 = arith.constant 0 : index
    %14 = vector.load %arg1[%c0_9, %c0_10, %c0_11] : memref<1x128x128xbf16, #tpu.memory_space<vmem>>, vector<1x128x128xbf16>
    %15 = vector.shape_cast %14 : vector<1x128x128xbf16> to vector<128x128xbf16>
    %16 = arith.truncf %13 : vector<128x128xf32> to vector<128x128xbf16>
    %cst_12 = arith.constant dense<0.000000e+00> : vector<128x128xf32>
    %17 = tpu.matmul %15, %16, %cst_12 {dimension_numbers = #tpu.dot_dimension_numbers<[1], [0], [0], [1], [0, 0, 1, 1], [], []>} : vector<128x128xbf16>, vector<128x128xbf16>, vector<128x128xf32> -> vector<128x128xf32>
    %c0_13 = arith.constant 0 : index
    %c0_14 = arith.constant 0 : index
    %18 = vector.load %arg6[%c0_13, %c0_14] : memref<1x128xf32, #tpu.memory_space<vmem>>, vector<1x128xf32>
    %19 = vector.broadcast %18 : vector<1x128xf32> to vector<128x128xf32>
    %20 = arith.addf %17, %19 : vector<128x128xf32>
    %cst_15 = arith.constant 0.000000e+00 : f32
    %21 = vector.broadcast %cst_15 : f32 to vector<128x128xf32>
    %22 = arith.maximumf %20, %21 : vector<128x128xf32>
    %c0_16 = arith.constant 0 : index
    %c0_17 = arith.constant 0 : index
    %23 = vector.load %arg7[%c0_16, %c0_17] : memref<16x128xf32, #tpu.memory_space<vmem>>, vector<16x128xf32>
    %cst_18 = arith.constant dense<0.000000e+00> : vector<16x128xf32>
    %24 = tpu.matmul %23, %22, %cst_18 {dimension_numbers = #tpu.dot_dimension_numbers<[1], [0], [0], [1], [0, 0, 1, 1], [], []>} : vector<16x128xf32>, vector<128x128xf32>, vector<16x128xf32> -> vector<16x128xf32>
    %25 = vector.extract_strided_slice %24 {offsets = [0, 0], sizes = [16, 32], strides = [1, 1]} : vector<16x128xf32> to vector<16x32xf32>
    %26 = arith.truncf %25 : vector<16x32xf32> to vector<16x32xbf16>
    %c0_19 = arith.constant 0 : index
    %c0_20 = arith.constant 0 : index
    %27 = vector.load %arg8[%c0_19, %c0_20] : memref<32x128xbf16, #tpu.memory_space<vmem>>, vector<32x128xbf16>
    %cst_21 = arith.constant dense<0.000000e+00> : vector<16x128xf32>
    %28 = tpu.matmul %26, %27, %cst_21 {dimension_numbers = #tpu.dot_dimension_numbers<[1], [0], [0], [1], [0, 0, 1, 1], [], []>} : vector<16x32xbf16>, vector<32x128xbf16>, vector<16x128xf32> -> vector<16x128xf32>
    %c0_22 = arith.constant 0 : index
    %c0_23 = arith.constant 0 : index
    %29 = vector.load %arg9[%c0_22, %c0_23] : memref<1x128xf32, #tpu.memory_space<vmem>>, vector<1x128xf32>
    %30 = vector.broadcast %29 : vector<1x128xf32> to vector<16x128xf32>
    %31 = arith.addf %28, %30 : vector<16x128xf32>
    %c0_24 = arith.constant 0 : index
    %c0_25 = arith.constant 0 : index
    %32 = vector.load %arg10[%c0_24, %c0_25] : memref<16x128xf32, #tpu.memory_space<vmem>>, vector<16x128xf32>
    tpu.vector_store %arg10[%c0_24, %c0_25], %31 {strides = array<i32>} : memref<16x128xf32, #tpu.memory_space<vmem>>, vector<16x128xf32>,
    return
  }
  func.func @transform_0(%arg0: i32) -> (i32, i32, i32) {
    %c0_i32 = arith.constant 0 : i32
    %c0_i32_0 = arith.constant 0 : i32
    %c0_i32_1 = arith.constant 0 : i32
    return %arg0, %c0_i32, %c0_i32_0 : i32, i32, i32
  }
  func.func @transform_1(%arg0: i32) -> (i32, i32, i32) {
    %c0_i32 = arith.constant 0 : i32
    %c0_i32_0 = arith.constant 0 : i32
    %c0_i32_1 = arith.constant 0 : i32
    return %arg0, %c0_i32, %c0_i32_0 : i32, i32, i32
  }
  func.func @transform_2(%arg0: i32) -> (i32, i32) {
    %c0_i32 = arith.constant 0 : i32
    %c0_i32_0 = arith.constant 0 : i32
    %c0_i32_1 = arith.constant 0 : i32
    return %c0_i32, %c0_i32_0 : i32, i32
  }
  func.func @transform_3(%arg0: i32) -> (i32, i32) {
    %c0_i32 = arith.constant 0 : i32
    %c0_i32_0 = arith.constant 0 : i32
    %c0_i32_1 = arith.constant 0 : i32
    return %c0_i32, %c0_i32_0 : i32, i32
  }
  func.func @transform_4(%arg0: i32) -> (i32, i32) {
    %c0_i32 = arith.constant 0 : i32
    %c0_i32_0 = arith.constant 0 : i32
    %c0_i32_1 = arith.constant 0 : i32
    return %c0_i32, %c0_i32_0 : i32, i32
  }
  func.func @transform_5(%arg0: i32) -> (i32, i32) {
    %c0_i32 = arith.constant 0 : i32
    %c0_i32_0 = arith.constant 0 : i32
    %c0_i32_1 = arith.constant 0 : i32
    return %c0_i32, %c0_i32_0 : i32, i32
  }
  func.func @transform_6(%arg0: i32) -> (i32, i32) {
    %c0_i32 = arith.constant 0 : i32
    %c0_i32_0 = arith.constant 0 : i32
    %c0_i32_1 = arith.constant 0 : i32
    return %c0_i32, %c0_i32_0 : i32, i32
  }
  func.func @transform_7(%arg0: i32) -> (i32, i32) {
    %c0_i32 = arith.constant 0 : i32
    %c0_i32_0 = arith.constant 0 : i32
    %c0_i32_1 = arith.constant 0 : i32
    return %c0_i32, %c0_i32_0 : i32, i32
  }
  func.func @transform_8(%arg0: i32) -> (i32, i32) {
    %c0_i32 = arith.constant 0 : i32
    %c0_i32_0 = arith.constant 0 : i32
    %c0_i32_1 = arith.constant 0 : i32
    return %c0_i32, %c0_i32_0 : i32, i32
  }
  func.func @transform_9(%arg0: i32) -> (i32, i32) {
    %c0_i32 = arith.constant 0 : i32
    %c0_i32_0 = arith.constant 0 : i32
    return %arg0, %c0_i32 : i32, i32
  }
}

</mosaic_0001>

<bundles_post_ra>
// kernel: tpu_custom_call.1
= control target key start
LH: loop header
LB: loop body
LE: loop exit
PB: predicated region body
PF: predicated region fallthrough
CT: control target
= control target key end

     0   :  { %14 = vsyncpa [#allocation3], 0  ;;  %s1691_s0 = inlined_call_operand.vmem [shape: bf16[2,128,128], index: 0, kind: input, shape index: {}]   ;;  %s1692_s1 = inlined_call_operand.vmem [shape: f32[2,128,1], index: 1, kind: input, shape index: {}]   ;;  %s1693_s2 = inlined_call_operand.vmem [shape: f32[1,32], index: 2, kind: input, shape index: {}]   ;;  %s1694_s3 = inlined_call_operand.vmem [shape: f32[1,32], index: 3, kind: input, shape index: {}]   ;;  %s1695_s4 = inlined_call_operand.vmem [shape: bf16[32,128], index: 4, kind: input, shape index: {}]   ;;  %s1696_s5 = inlined_call_operand.vmem [shape: f32[1,128], index: 5, kind: input, shape index: {}]   ;;  %s1697_s6 = inlined_call_operand.vmem [shape: f32[16,128], index: 6, kind: input, shape index: {}]   ;;  %s1698_s7 = inlined_call_operand.vmem [shape: bf16[32,128], index: 7, kind: input, shape index: {}]   ;;  %s1699_s8 = inlined_call_operand.vmem [shape: f32[1,128], index: 8, kind: input, shape index: {}]   ;;  %s1700_s9 = inlined_call_operand.hbm [shape: f32[32,128], index: 9, kind: output, shape index: {}]  }
   0x1   :  { %16 = vsyncpa [#allocation3 + $0x1], 0  ;;  %s1478_s30 = smov 0   ;;  %s1480_s10 = smov 0  }
   0x2   :  { %s1482_s11 = smov 0   ;;  %s1484_s12 = smov 0  }
   0x3 LB: > { %s1499_s13 = sadd.s32 4294967295, %s1420_s12   ;;  %s1084_s14 = sadd.s32 4294967294, %s1420_s12   ;;  %s1420_s12 = sphi %s1484_s12, %s1706_s12   ;;  %s1416_s11 = sphi %s1482_s11, %s1705_s11   ;;  %s1412_s10 = sphi %s1480_s10, %s1704_s10   ;;  %s1408_s30 = sphi %s1478_s30, %s1703_s30  }
   0x4   : > { %s1503_s15 = sadd.s32 1, %s1420_s12   ;;  %s228_s16 = sadd.s32 1, %s1416_s11 }
   0x5   : > { %s225_s17 = ssub.s32 %s1420_s12, %s1503_s15  ;;  %p238_p0 = scmp.ne.s32.totalorder %s1416_s11, %s1412_s10 }
   0x6   : > { %p226_p1 = scmp.eq.s32.totalorder %s225_s17, 0  ;;  %p239_p2 = scmp.eq.s32.totalorder %s1499_s13, 1 }
   0x7   : > { %p244_p3 = scmp.ne.s32.totalorder %s1412_s10, %s1408_s30  ;;  %p245_p4 = scmp.eq.s32.totalorder %s1084_s14, 1 }
   0x8   : > { %s1514_s18 = scalar_select %p226_p1, %s1416_s11, %s228_s16  }
   0x9   : > { %p1516_p5 = por %p239_p2, %p238_p0  ;;  %p1520_p6 = por %p245_p4, %p244_p3 }
   0xa   : > { %p1087_p7 = scmp.ge.s32.totalorder %s1420_s12, 1  ;;  %p300_p8 = scmp.lt.s32.totalorder %s1420_s12, 3 }
   0xc   : > { %p301_p9 = pnand %p1087_p7, %p300_p8 }
   0xd   : > { %p341_p10 = scmp.lt.s32.totalorder (!%p301_p9), %s1499_s13, 1  ;;  %v1422_v0 = vmov (!%p301_p9), 0   ;;  %v1346_v5 = vld [vmem:[%s1695_s4] sm:$0xff] (!%p301_p9)   ;;  %v1347_v8 = vld [vmem:[%s1695_s4 + $0x8] sm:$0xff] (!%p301_p9)   ;;  %vm535_vm0 = vcmask (!%p301_p9), 261120   ;;  %vm1424_vm1 = vmmov (!%p301_p9), 0  }
   0xe   : > { %304 = sbr.rel (%p301_p9) target bundleno = 1115 (0x45b), region = 56  ;;  %1345 = vset.pattern.permute.xlu1 (!%p301_p9), %v1422_v0  ;;  %1344 = vset.pattern.permute.xlu0 (!%p301_p9), %v1422_v0  ;;  %v1561_v19 = vld [vmem:[%s1693_s2] ss:$0 sm:$0xff] (!%p301_p9)  ;;  %s1125_s14 = sshll.u32 (!%p301_p9), %s1499_s13, 8 }
   0xf   : > { %1173 = vmatprep.subr.bf16.mxu0 (!%p301_p9), %v1346_v5  ;;  %v1566_v22 = vld [vmem:[%s1694_s3] ss:$0 sm:$0xff] (!%p301_p9)  ;;  %s1425_s24 = smov (!%p301_p9), [#allocation2]  }
  0x10   : > { %1174 = vmatpush3.bf16.msra.mxu0 (!%p301_p9), %v1346_v5 }
  0x11   : > { %1175 = vmatprep.subr.bf16.mxu0 (!%p301_p9), %v1347_v8 }
  0x14   : > { %1176 = vmatpush3.bf16.msra.mxu0 (!%p301_p9), %v1347_v8 }
  0x15   : > { %s1528_s21 = scalar_select %p341_p10, %s1499_s13, 1 }
  0x17   : > { %s1124_s22 = sshll.u32 %s1528_s21, 7  ;;  %s1123_s23 = sshll.u32 %s1528_s21, 6 }
  0x18   : > { %s1534_s25 = scalar_lea.vmem %s1692_s1, %s1124_s22  ;;  %s1612_s26 = scalar_lea.vmem %s1691_s0, %s1123_s23 }
  0x19   : > { %v355_v1 = vld [vmem:[%s1534_s25 + $0x10] sm:$0xff]  ;;  %v353_v2 = vld [vmem:[%s1534_s25] sm:$0xff]  ;;  %v356_v3 = vld [vmem:[%s1534_s25 + $0x18] sm:$0xff]  ;;  %s1648_s22 = scalar_lea.hbm %s1700_s9, %s1125_s14 }
  0x1a   : > { %382 = vperm.xlu1 %1345, %v355_v1   ;;  %372 = vperm.xlu0 %1344, %v353_v2   ;;  %v354_v4 = vld [vmem:[%s1534_s25 + $0x8] sm:$0xff]  ;;  %v357_v7 = vld [vmem:[%s1534_s25 + $0x20] sm:$0xff]  ;;  %v360_v9 = vld [vmem:[%s1534_s25 + $0x38] sm:$0xff] }
  0x1b   : > { %v358_v6 = vld [vmem:[%s1534_s25 + $0x28] sm:$0xff]  ;;  %v359_v10 = vld [vmem:[%s1534_s25 + $0x30] sm:$0xff]  ;;  %v361_v12 = vld [vmem:[%s1534_s25 + $0x40] sm:$0xff] }
  0x1c   : > { %v362_v11 = vld [vmem:[%s1534_s25 + $0x48] sm:$0xff]  ;;  %v364_v13 = vld [vmem:[%s1534_s25 + $0x58] sm:$0xff]  ;;  %v363_v14 = vld [vmem:[%s1534_s25 + $0x50] sm:$0xff] }
  0x1d   : > { %v366_v15 = vld [vmem:[%s1534_s25 + $0x68] sm:$0xff]  ;;  %v365_v16 = vld [vmem:[%s1534_s25 + $0x60] sm:$0xff]  ;;  %v368_v17 = vld [vmem:[%s1534_s25 + $0x78] sm:$0xff] }
  0x1e   : > { %387 = vperm.xlu1 %1345, %v356_v3   ;;  %377 = vperm.xlu0 %1344, %v354_v4   ;;  %v367_v18 = vld [vmem:[%s1534_s25 + $0x70] sm:$0xff]  ;;  %s338_s25 = sand.u32 1, %s1412_s10  }
  0x1f   : > { %s1650_s23 = scalar_lea.sflag [#allocation3], %s338_s25 }
  0x22   : > { %397 = vperm.xlu1 %1345, %v358_v6   ;;  %392 = vperm.xlu0 %1344, %v357_v7  }
  0x26   : > { %407 = vperm.xlu1 %1345, %v360_v9   ;;  %402 = vperm.xlu0 %1344, %v359_v10  }
  0x2a   : > { %417 = vperm.xlu1 %1345, %v362_v11   ;;  %412 = vperm.xlu0 %1344, %v361_v12  }
  0x2e   : > { %427 = vperm.xlu1 %1345, %v364_v13   ;;  %422 = vperm.xlu0 %1344, %v363_v14  }
  0x32   : > { %437 = vperm.xlu1 %1345, %v366_v15   ;;  %432 = vperm.xlu0 %1344, %v365_v16  }
  0x36   : > { %447 = vperm.xlu1 %1345, %v368_v17   ;;  %442 = vperm.xlu0 %1344, %v367_v18  }
  0x99   : > { %v383_v20 = vpop.permute.xlu1 %382  ;;  %v373_v21 = vpop.permute.xlu0 %372 }
  0x9a   : > { %v458_v23 = vmul.f32 %v1561_v19, %v383_v20  ;;  %v456_v24 = vmul.f32 %v1561_v19, %v373_v21 }
  0x9c   : > { %v481_v25 = vadd.f32 %v1566_v22, %v458_v23  ;;  %v479_v26 = vadd.f32 %v1566_v22, %v456_v24 }
  0x9d   : > { %v388_v27 = vpop.permute.xlu1 %387  ;;  %v378_v28 = vpop.permute.xlu0 %377 }
  0x9e   : > { %v459_v29 = vmul.f32 %v1561_v19, %v388_v27  ;;  %v457_v30 = vmul.f32 %v1561_v19, %v378_v28  ;;  %v497_v33 = vmax.f32 %v481_v25, 0.0  ;;  %v495_v34 = vmax.f32 %v479_v26, 0.0 }
  0xa0   : > { %v482_v31 = vadd.f32 %v1566_v22, %v459_v29  ;;  %v480_v32 = vadd.f32 %v1566_v22, %v457_v30 }
  0xa1   : > { %v398_v35 = vpop.permute.xlu1 %397  ;;  %v393_v36 = vpop.permute.xlu0 %392 }
  0xa2   : > { %v498_v37 = vmax.f32 %v482_v31, 0.0  ;;  %v496_v38 = vmax.f32 %v480_v32, 0.0  ;;  %v461_v39 = vmul.f32 %v1561_v19, %v398_v35  ;;  %v460_v40 = vmul.f32 %v1561_v19, %v393_v36 }
  0xa4   : > { %v512_v41 = vpack.c.bf16 %v498_v37, %v497_v33  ;;  %v484_v42 = vadd.f32 %v1566_v22, %v461_v39  ;;  %v483_v43 = vadd.f32 %v1566_v22, %v460_v40  ;;  %v511_v44 = vpack.c.bf16 %v496_v38, %v495_v34 }
  0xa5   : > { %v408_v45 = vpop.permute.xlu1 %407  ;;  %v403_v46 = vpop.permute.xlu0 %402 }
  0xa6   : > { %v500_v47 = vmax.f32 %v484_v42, 0.0  ;;  %v499_v48 = vmax.f32 %v483_v43, 0.0  ;;  %v463_v49 = vmul.f32 %v1561_v19, %v408_v45  ;;  %v462_v50 = vmul.f32 %v1561_v19, %v403_v46  ;;  %1177 = vmatprep.mubr.msk.bf16.mxu0 %vm535_vm0, %v511_v44 }
  0xa7   : > { %1178 = vmatmul.mubr.msk.bf16.vlgmr.msra.gmra.mrb[0].mxu0 %vm535_vm0, %v512_v41 }
  0xa8   : > { %v513_v51 = vpack.c.bf16 %v500_v47, %v499_v48  ;;  %v486_v52 = vadd.f32 %v1566_v22, %v463_v49  ;;  %v485_v53 = vadd.f32 %v1566_v22, %v462_v50 }
  0xa9   : > { %v418_v54 = vpop.permute.xlu1 %417  ;;  %v413_v55 = vpop.permute.xlu0 %412 }
  0xaa   : > { %v502_v56 = vmax.f32 %v486_v52, 0.0  ;;  %v501_v57 = vmax.f32 %v485_v53, 0.0  ;;  %v465_v58 = vmul.f32 %v1561_v19, %v418_v54  ;;  %v464_v59 = vmul.f32 %v1561_v19, %v413_v55  ;;  %1181 = vmatprep.mubr.msk.bf16.mxu0 %vm535_vm0, %v513_v51  ;;  %v1349_v54 = vld [vmem:[%s1612_s26 + $0x8] sm:$0xff]   ;;  %v1350_v55 = vld [vmem:[%s1612_s26 + $0x10] sm:$0xff]  }
  0xac   : > { %v514_v60 = vpack.c.bf16 %v502_v56, %v501_v57  ;;  %v488_v61 = vadd.f32 %v1566_v22, %v465_v58  ;;  %v487_v62 = vadd.f32 %v1566_v22, %v464_v59  ;;  %v1351_v56 = vld [vmem:[%s1612_s26 + $0x18] sm:$0xff]   ;;  %v1352_v57 = vld [vmem:[%s1612_s26 + $0x20] sm:$0xff]   ;;  %v1353_v58 = vld [vmem:[%s1612_s26 + $0x28] sm:$0xff]  }
  0xad   : > { %v428_v63 = vpop.permute.xlu1 %427  ;;  %v423_v0 = vpop.permute.xlu0 %422  ;;  %v1354_v59 = vld [vmem:[%s1612_s26 + $0x30] sm:$0xff]  }
  0xae   : > { %v504_v1 = vmax.f32 %v488_v61, 0.0  ;;  %v503_v2 = vmax.f32 %v487_v62, 0.0  ;;  %v467_v3 = vmul.f32 %v1561_v19, %v428_v63  ;;  %v466_v4 = vmul.f32 %v1561_v19, %v423_v0  ;;  %v849_v61 = vld [vmem:[%s1697_s6] sm:$0xff] }
  0xaf   : > { %1182 = vmatmul.mubr.msk.bf16.gmra.mrb[4].mxu0 %vm535_vm0, %v514_v60  ;;  %v1355_v60 = vld [vmem:[%s1612_s26 + $0x38] sm:$0xff]   ;;  %v1105_v62 = vld [vmem:[%s1696_s5] ss:$0 sm:$0xff] }
  0xb0   : > { %v515_v5 = vpack.c.bf16 %v504_v1, %v503_v2  ;;  %v490_v6 = vadd.f32 %v1566_v22, %v467_v3  ;;  %v489_v7 = vadd.f32 %v1566_v22, %v466_v4 }
  0xb1   : > { %v438_v8 = vpop.permute.xlu1 %437  ;;  %v433_v9 = vpop.permute.xlu0 %432 }
  0xb2   : > { %v506_v10 = vmax.f32 %v490_v6, 0.0  ;;  %v505_v11 = vmax.f32 %v489_v7, 0.0  ;;  %v469_v12 = vmul.f32 %v1561_v19, %v438_v8  ;;  %v468_v13 = vmul.f32 %v1561_v19, %v433_v9  ;;  %1185 = vmatprep.mubr.msk.bf16.mxu0 %vm535_vm0, %v515_v5 }
  0xb4   : > { %v516_v14 = vpack.c.bf16 %v506_v10, %v505_v11  ;;  %v492_v15 = vadd.f32 %v1566_v22, %v469_v12  ;;  %v491_v16 = vadd.f32 %v1566_v22, %v468_v13 }
  0xb5   : > { %v448_v17 = vpop.permute.xlu1 %447  ;;  %v443_v18 = vpop.permute.xlu0 %442 }
  0xb6   : > { %v508_v20 = vmax.f32 %v492_v15, 0.0  ;;  %v507_v21 = vmax.f32 %v491_v16, 0.0  ;;  %v471_v23 = vmul.f32 %v1561_v19, %v448_v17  ;;  %v470_v24 = vmul.f32 %v1561_v19, %v443_v18  ;;  %v1348_v19 = vld [vmem:[%s1612_s26] sm:$0xff]   ;;  %s1088_s26 = sshll.u32 %s338_s25, 4 }
  0xb7   : > { %1186 = vmatmul.mubr.msk.bf16.gmra.mrb[8].mxu0 %vm535_vm0, %v516_v14  ;;  %1209 = vmatprep.mubr.bf16.mxu1 %v1348_v19  ;;  %s340_s28 = scalar_lea.vmem [#allocation2], %s1088_s26  ;;  %s1362_s26 = sshll.u32 %s1425_s24, 4  ;;  %s1363_s26 = int_to_ptr.vmem [resolvable:$false] %s1362_s26 }
  0xb8   : > { %v517_v25 = vpack.c.bf16 %v508_v20, %v507_v21  ;;  %v494_v26 = vadd.f32 %v1566_v22, %v471_v23  ;;  %v493_v27 = vadd.f32 %v1566_v22, %v470_v24  ;;  %s1010_s29 = sshll.u32 %s340_s28, 4  ;;  %s1364_s21 = scalar_lea.vmem %s1363_s26, 512  ;;  %s1643_s29 = int_to_ptr.vmem [resolvable:$true] %s1010_s29 }
  0xb9   : > { %s1358_s13 = scalar_lea.vmem %s1643_s29, 256  ;;  %p1365_p0 = scmp.lt.s32.totalorder %s1643_s29, %s1363_s26 }
  0xba   : > { %v510_v28 = vmax.f32 %v494_v26, 0.0  ;;  %v509_v29 = vmax.f32 %v493_v27, 0.0  ;;  %1189 = vmatprep.mubr.msk.bf16.mxu0 %vm535_vm0, %v517_v25  ;;  %p1359_p11 = scmp.ne.s32.totalorder %s1643_s29, %s1358_s13  ;;  %p1366_p1 = scmp.lt.s32.totalorder %s1364_s21, %s1358_s13 }
  0xbc   : > { %v518_v30 = vpack.c.bf16 %v510_v28, %v509_v29  ;;  %p1360_p12 = pnand %p1359_p11, %p1516_p5  ;;  %p1367_p2 = por %p1366_p1, %p1365_p0 }
  0xbe   : > { %p1361_p13 = pneg %p1360_p12 }
  0xbf   : > { %1190 = vmatmul.mubr.msk.bf16.gmra.mrb[12].mxu0 %vm535_vm0, %v518_v30 }
  0xc0   : > { %1257 = vmatprep.mubr.f32.mxu0 %v849_v61  ;;  %p1368_p3 = pnand %p1367_p2, %p1361_p13 }
 0x17a   : > { %v1179_v31 = vpop.f32.mrb[0].mxu0 }
 0x17b   : > { %v594_v32 = vpop.f32.mrb[1].mxu0 }
 0x17c   : > { %v1180_v33 = vpop.f32.mrb[2].mxu0 }
 0x17d   : > { %v674_v22 = vpack.c.bf16 %v1180_v33, %v1179_v31  ;;  %v597_v34 = vpop.f32.mrb[3].mxu0 }
 0x17e   : > { %v673_v35 = vpack.c.bf16 %v597_v34, %v594_v32 }
 0x180   : > { %1193 = vmatprep.subr.bf16.mxu1 %v673_v35 }
 0x181   : > { %1194 = vmatpush3.bf16.msra.mxu1 %v673_v35 }
 0x182   : > { %v1183_v36 = vpop.f32.mrb[4].mxu0  ;;  %1195 = vmatprep.subr.bf16.mxu1 %v674_v22 }
 0x183   : > { %v610_v37 = vpop.f32.mrb[5].mxu0 }
 0x184   : > { %v1184_v38 = vpop.f32.mrb[6].mxu0 }
 0x185   : > { %v676_v39 = vpack.c.bf16 %v1184_v38, %v1183_v36  ;;  %v613_v40 = vpop.f32.mrb[7].mxu0  ;;  %1196 = vmatpush3.bf16.msra.mxu1 %v674_v22 }
 0x186   : > { %v675_v41 = vpack.c.bf16 %v613_v40, %v610_v37 }
 0x188   : > { %1197 = vmatprep.subr.bf16.mxu1 %v675_v41 }
 0x189   : > { %1198 = vmatpush3.bf16.msra.mxu1 %v675_v41 }
 0x18a   : > { %v1187_v42 = vpop.f32.mrb[8].mxu0  ;;  %1199 = vmatprep.subr.bf16.mxu1 %v676_v39 }
 0x18b   : > { %v626_v43 = vpop.f32.mrb[9].mxu0 }
 0x18c   : > { %v1188_v44 = vpop.f32.mrb[10].mxu0 }
 0x18d   : > { %v678_v45 = vpack.c.bf16 %v1188_v44, %v1187_v42  ;;  %v629_v46 = vpop.f32.mrb[11].mxu0  ;;  %1200 = vmatpush3.bf16.msra.mxu1 %v676_v39 }
 0x18e   : > { %v677_v47 = vpack.c.bf16 %v629_v46, %v626_v43 }
 0x190   : > { %1201 = vmatprep.subr.bf16.mxu1 %v677_v47 }
 0x191   : > { %1202 = vmatpush3.bf16.msra.mxu1 %v677_v47 }
 0x192   : > { %v1191_v48 = vpop.f32.mrb[12].mxu0  ;;  %1203 = vmatprep.subr.bf16.mxu1 %v678_v45 }
 0x193   : > { %v642_v49 = vpop.f32.mrb[13].mxu0 }
 0x194   : > { %v1192_v50 = vpop.f32.mrb[14].mxu0 }
 0x195   : > { %v680_v51 = vpack.c.bf16 %v1192_v50, %v1191_v48  ;;  %v645_v52 = vpop.f32.mrb[15].mxu0  ;;  %1204 = vmatpush3.bf16.msra.mxu1 %v678_v45 }
 0x196   : > { %v679_v53 = vpack.c.bf16 %v645_v52, %v642_v49 }
 0x198   : > { %1205 = vmatprep.subr.bf16.mxu1 %v679_v53 }
 0x199   : > { %1206 = vmatpush3.bf16.msra.mxu1 %v679_v53 }
 0x19a   : > { %1207 = vmatprep.subr.bf16.mxu1 %v680_v51 }
 0x19d   : > { %1208 = vmatpush3.bf16.msra.mxu1 %v680_v51 }
 0x1a0   : > { %1210 = vmatmul.mubr.bf16.vlgmr.msra.gmra.mrb[0].mxu1 %v1349_v54 }
 0x1a1   : > { %1213 = vmatprep.mubr.bf16.mxu1 %v1350_v55  ;;  %v850_v55 = vld [vmem:[%s1697_s6 + $0x8] sm:$0xff] }
 0x1a8   : > { %1214 = vmatmul.mubr.bf16.gmra.mrb[4].mxu1 %v1351_v56  ;;  %v1356_v56 = vld [vmem:[%s1698_s7] sm:$0xff]  }
 0x1a9   : > { %1217 = vmatprep.mubr.bf16.mxu1 %v1352_v57  ;;  %v1423_v57 = vmov 0.0  }
 0x1b0   : > { %1218 = vmatmul.mubr.bf16.gmra.mrb[8].mxu1 %v1353_v58  ;;  %v1357_v58 = vld [vmem:[%s1698_s7 + $0x8] sm:$0xff]  }
 0x1b1   : > { %1221 = vmatprep.mubr.bf16.mxu1 %v1354_v59 }
 0x1b8   : > { %1222 = vmatmul.mubr.bf16.gmra.mrb[12].mxu1 %v1355_v60 }
 0x273   : > { %v1211_v63 = vpop.f32.mrb[0].mxu1 }
 0x274   : > { %v779_v0 = vadd.f32 %v1211_v63, %v1105_v62  ;;  %v770_v1 = vpop.f32.mrb[1].mxu1 }
 0x275   : > { %v771_v2 = vadd.f32 %v1105_v62, %v770_v1  ;;  %v1212_v3 = vpop.f32.mrb[2].mxu1 }
 0x276   : > { %v782_v4 = vadd.f32 %v1212_v3, %v1105_v62  ;;  %v773_v5 = vpop.f32.mrb[3].mxu1  ;;  %v835_v7 = vmax.f32 %v779_v0, 0.0 }
 0x277   : > { %v774_v6 = vadd.f32 %v1105_v62, %v773_v5  ;;  %v833_v9 = vmax.f32 %v771_v2, 0.0 }
 0x278   : > { %v836_v8 = vmax.f32 %v782_v4, 0.0 }
 0x279   : > { %v834_v10 = vmax.f32 %v774_v6, 0.0 }
 0x27a   : > { %v1272_v11 = vpack.c.bf16 %v836_v8, %v835_v7 }
 0x27b   : > { %v1268_v12 = vpack.c.bf16 %v834_v10, %v833_v9  ;;  %v1215_v13 = vpop.f32.mrb[4].mxu1 }
 0x27c   : > { %v795_v14 = vadd.f32 %v1215_v13, %v1105_v62  ;;  %v786_v15 = vpop.f32.mrb[5].mxu1 }
 0x27d   : > { %v787_v16 = vadd.f32 %v1105_v62, %v786_v15  ;;  %v1216_v17 = vpop.f32.mrb[6].mxu1  ;;  %1269 = vmatprep.subr.bf16.mxu0 %v1268_v12 }
 0x27e   : > { %v798_v18 = vadd.f32 %v1216_v17, %v1105_v62  ;;  %v789_v20 = vpop.f32.mrb[7].mxu1  ;;  %1271 = vmatpush3.bf16.msra.mxu0 %v1268_v12  ;;  %v839_v23 = vmax.f32 %v795_v14, 0.0 }
 0x27f   : > { %v790_v21 = vadd.f32 %v1105_v62, %v789_v20  ;;  %1273 = vmatprep.subr.bf16.mxu0 %v1272_v11  ;;  %v837_v25 = vmax.f32 %v787_v16, 0.0 }
 0x280   : > { %v840_v24 = vmax.f32 %v798_v18, 0.0 }
 0x281   : > { %v838_v26 = vmax.f32 %v790_v21, 0.0 }
 0x282   : > { %v1280_v27 = vpack.c.bf16 %v840_v24, %v839_v23  ;;  %1275 = vmatpush3.bf16.msra.mxu0 %v1272_v11 }
 0x283   : > { %v1276_v28 = vpack.c.bf16 %v838_v26, %v837_v25  ;;  %v1219_v29 = vpop.f32.mrb[8].mxu1 }
 0x284   : > { %v811_v30 = vadd.f32 %v1219_v29, %v1105_v62  ;;  %v802_v19 = vpop.f32.mrb[9].mxu1 }
 0x285   : > { %v803_v31 = vadd.f32 %v1105_v62, %v802_v19  ;;  %v1220_v32 = vpop.f32.mrb[10].mxu1  ;;  %1277 = vmatprep.subr.bf16.mxu0 %v1276_v28 }
 0x286   : > { %v814_v33 = vadd.f32 %v1220_v32, %v1105_v62  ;;  %v805_v22 = vpop.f32.mrb[11].mxu1  ;;  %1279 = vmatpush3.bf16.msra.mxu0 %v1276_v28  ;;  %v843_v35 = vmax.f32 %v811_v30, 0.0 }
 0x287   : > { %v806_v34 = vadd.f32 %v1105_v62, %v805_v22  ;;  %1281 = vmatprep.subr.bf16.mxu0 %v1280_v27  ;;  %v841_v37 = vmax.f32 %v803_v31, 0.0 }
 0x288   : > { %v844_v36 = vmax.f32 %v814_v33, 0.0 }
 0x289   : > { %v842_v38 = vmax.f32 %v806_v34, 0.0 }
 0x28a   : > { %v1288_v39 = vpack.c.bf16 %v844_v36, %v843_v35  ;;  %1283 = vmatpush3.bf16.msra.mxu0 %v1280_v27 }
 0x28b   : > { %v1284_v40 = vpack.c.bf16 %v842_v38, %v841_v37  ;;  %v1223_v41 = vpop.f32.mrb[12].mxu1 }
 0x28c   : > { %v827_v42 = vadd.f32 %v1223_v41, %v1105_v62  ;;  %v818_v43 = vpop.f32.mrb[13].mxu1 }
 0x28d   : > { %v819_v44 = vadd.f32 %v1105_v62, %v818_v43  ;;  %v1224_v45 = vpop.f32.mrb[14].mxu1  ;;  %1285 = vmatprep.subr.bf16.mxu0 %v1284_v40 }
 0x28e   : > { %v830_v46 = vadd.f32 %v1224_v45, %v1105_v62  ;;  %v821_v47 = vpop.f32.mrb[15].mxu1  ;;  %1287 = vmatpush3.bf16.msra.mxu0 %v1284_v40  ;;  %v847_v49 = vmax.f32 %v827_v42, 0.0 }
 0x28f   : > { %v822_v48 = vadd.f32 %v1105_v62, %v821_v47  ;;  %1289 = vmatprep.subr.bf16.mxu0 %v1288_v39  ;;  %v845_v51 = vmax.f32 %v819_v44, 0.0  ;;  %v1114_v62 = vld [vmem:[%s1699_s8] ss:$0 sm:$0xff] }
 0x290   : > { %v848_v50 = vmax.f32 %v830_v46, 0.0 }
 0x291   : > { %v846_v52 = vmax.f32 %v822_v48, 0.0 }
 0x292   : > { %v1296_v53 = vpack.c.bf16 %v848_v50, %v847_v49  ;;  %1291 = vmatpush3.bf16.msra.mxu0 %v1288_v39 }
 0x293   : > { %v1292_v54 = vpack.c.bf16 %v846_v52, %v845_v51 }
 0x295   : > { %1293 = vmatprep.subr.bf16.mxu0 %v1292_v54 }
 0x296   : > { %1295 = vmatpush3.bf16.msra.mxu0 %v1292_v54 }
 0x297   : > { %1297 = vmatprep.subr.bf16.mxu0 %v1296_v53 }
 0x29a   : > { %1299 = vmatpush3.bf16.msra.mxu0 %v1296_v53 }
 0x29b   : > { %1260 = vmatprep.subr.bf16.mxu0 %v1423_v57 }
 0x29d   : > { %1258 = vmatmul.mubr.f32.vlgmr.msra.gmra.mrb[16].mxu0 %v850_v55 }
 0x29e   : > { %1261 = vmatpush3.bf16.msra.mxu0 %v1356_v56  ;;  %1264 = vmatprep.mubr.msk.bf16.mxu0 %vm1424_vm1, %v1423_v57 }
 0x29f   : > { %1262 = vmatprep.subr.bf16.mxu0 %v1423_v57 }
 0x2a2   : > { %1263 = vmatpush3.bf16.msra.mxu0 %v1357_v58 }
 0x370   : > { %v1259_v59 = vpop.f32.mrb[16].mxu0 }
 0x371   : > { %v917_v60 = vpop.f32.mrb[17].mxu0 }
 0x372   : > { %v926_v61 = vpack.c.bf16 %v1259_v59, %v917_v60 }
 0x374   : > { %1265 = vmatmul.mubr.msk.bf16.vlgmr.msra.gmra.mrb[20].mxu0 %vm535_vm0, %v926_v61 }
 0x447   : > { %v987_v63 = vpop.f32.mrb[20].mxu0 }
 0x448   : > { %v988_v0 = vadd.f32 %v1114_v62, %v987_v63  ;;  %v1266_v1 = vpop.f32.mrb[21].mxu0 }
 0x449   : > { %v990_v2 = vpop.f32.mrb[22].mxu0 }
 0x44a   : > { %994 = vst [vmem:[%s340_s28] sm:$0xff] %v988_v0  ;;  %v991_v3 = vadd.f32 %v1114_v62, %v990_v2  ;;  %v1267_v4 = vpop.f32.mrb[23].mxu0 }
 0x44c   : > { %995 = vst [vmem:[%s340_s28 + $0x8] sm:$0xff] %v991_v3 }
 0x44d   : > { %1371 = shalt.err (!%p1368_p3)
}
 0x44e   : > { %s1372_s25 = scalar_lea.hbm %s1648_s22, 256  ;;  %s1376_s14 = scalar_lea.hbm %s1700_s9, 512 }
 0x44f   : > { %p1373_p4 = scmp.ne.s32.totalorder %s1648_s22, %s1372_s25  ;;  %p1377_p9 = scmp.lt.u32.totalorder %s1648_s22, %s1700_s9 }
 0x450   : > { %p1378_p10 = scmp.lt.u32.totalorder %s1376_s14, %s1372_s25  ;;  %p1380_p12 = scmp.lt.u32.totalorder %s1372_s25, %s1648_s22 }
 0x451   : > { %p1374_p7 = pnand %p1373_p4, %p1516_p5 }
 0x452   : > { %p1379_p11 = por %p1378_p10, %p1377_p9 }
 0x453   : > { %p1375_p8 = pneg %p1374_p7 }
 0x454   : > { %p1381_p13 = por %p1380_p12, %p1379_p11 }
 0x456   : > { %p1382_p0 = pnand %p1381_p13, %p1375_p8 }
 0x458   : > { %1385 = shalt.err (!%p1382_p0)
}
 0x459   : > { %s1426_s13 = smov 128   ;;  %s1427_s24 = smov 8  }
 0x45a   : > { %1300 = dma.vmem_to_hbm [thread:$0]  (%p1516_p5), %s1643_s29, 256, %s1648_s22, %s1650_s23, %s1426_s13, %s1426_s13, %s1427_s24  }
 0x45b PF: > { %p1306_p1 = scmp.ge.s32.totalorder %s1420_s12, 2  ;;  %s1025_s26 = sand.u32 1, %s1408_s30  }
 0x45c   : > { %s1026_s21 = scalar_lea.sflag [#allocation3], %s1025_s26 }
 0x45d   : > { %p1303_p2 = pnand %p1306_p1, %p1520_p6 }
 0x45f   : > { %1403 = dma.done.wait (!%p1303_p2), %s1026_s21, 256  }
 0x460   : > { %1405 = vsyncadd (!%p1303_p2), %s1026_s21, 4294967040  ;;  %p19_p3 = scmp.ge.s32.totalorder %s1503_s15, 4   ;;  %s1703_s30 = smov %s1412_s10 }
 0x461   : > { %s1704_s10 = smov %s1416_s11  ;;  %s1705_s11 = smov %s1514_s18 }
 0x462   : > { %s1706_s12 = smov %s1503_s15  ;;  %21 = sbr.rel (!%p19_p3) target bundleno = 3 (0x3), region = 94 }
 0x469   :  { %1031 = vsyncpa [#allocation3], 1 }
 0x46a   :  { %1033 = vsyncpa [#allocation3 + $0x1], 1 }

</bundles_post_ra>
